<compile_context>
chip_gen: v7x
topology: tpu7x:2x2x1
jax: 0.10.0
libtpu: 0.0.40
codegen_flags: <defaults>
</compile_context>

<pallas_src>
import math

import jax
import jax.numpy as jnp
from jax.experimental import pallas as pl
from jax.experimental.pallas import tpu as pltpu

NEG_SLOPE = 0.01  # torch.nn.LeakyReLU default


def _leaky_relu(h):
    # maximum(h, a*h) == leaky_relu(h) for 0 < a < 1; 2 VALU ops per vreg.
    return jnp.maximum(h, NEG_SLOPE * h)


def mlp_kernel(x_ref, w0_ref, w1_ref, w2_ref, b2_ref, o_ref):
    # Feature-major layout: batch is the last (128-lane) axis everywhere.
    x = x_ref[...]                                # (1, TB)
    e = (2.0 * jnp.pi) * x                        # (1, TB)

    # Single dense sin sweep over (2, TB): row 0 = sin(e), row 1 = sin(e+pi/2)
    # = cos(e).  Twice the sublane density of two separate (1, TB) calls.
    sc = jnp.sin(jnp.concatenate([e, e + (0.5 * jnp.pi)], axis=0))   # (2, TB)
    s = sc[0:1, :]                                # (1, TB)
    c = sc[1:2, :]                                # (1, TB)

    # Layer 0 (bias=False), K=2: two broadcast FMAs on the VPU (w0 is torch
    # layout (H1, 2)); MXU matmul with K=2 would mostly be padding.
    w0 = w0_ref[...]
    h = _leaky_relu(w0[:, 0:1] * s + w0[:, 1:2] * c)                 # (H1, TB)

    # Layer 1 (bias=False): MXU matmul, full-width N = TB lanes.
    h = _leaky_relu(
        jnp.dot(w1_ref[...], h, preferred_element_type=jnp.float32))  # (H2, TB)

    # Output layer (bias=True).  Lane-dense (F, TB) store.
    out = jnp.dot(w2_ref[...], h, preferred_element_type=jnp.float32)  # (F, TB)
    o_ref[...] = (out + b2_ref[...]).astype(o_ref.dtype)


def _round_up(a, m):
    return ((a + m - 1) // m) * m


def simple_mlp_forward(x, w0, w1, w2, b2, *, tile_b=32768,
                       feature_major_output=False):
    """SimpleMLP forward.

    x: (B, 1) f32.  w0/w1/w2: torch-layout (out, in).  b2: (F,).

    feature_major_output=False -> (B, F)  (matches the PyTorch module).
    feature_major_output=True  -> (F, B)  lane-dense slab straight from the
    kernel (recommended for large B: avoids an extra HBM transpose pass; fold
    the transpose into the consumer, e.g. via einsum dimension numbers).
    """
    B = x.shape[0]
    H1 = w0.shape[0]
    H2 = w1.shape[0]
    F = w2.shape[0]

    # Tile/grid derivation:
    #   * lane-aligned (multiple of 128) batch tiles,
    #   * tiles as large as tile_b (amortizes ~0.35us/step grid overhead),
    #   * >= 2 grid steps whenever B allows, so dimension_semantics=("parallel",)
    #     can shard the batch axis across both v7x TensorCores.
    b128 = _round_up(max(B, 1), 128)
    if b128 <= 128:
        n_tiles, tb = 1, 128
    else:
        n_tiles = max(2, pl.cdiv(b128, max(int(tile_b), 128)))
        tb = _round_up(pl.cdiv(b128, n_tiles), 128)
    b_pad = n_tiles * tb
    grid = (n_tiles,)

    # Feature-major (1, B) input; pad the batch tail only if needed.
    x_t = x.reshape(1, B).astype(jnp.float32)
    if b_pad != B:
        x_t = jnp.pad(x_t, ((0, 0), (0, b_pad - B)))
    b2_col = b2.reshape(F, 1).astype(jnp.float32)

    cost = pl.CostEstimate(
        flops=2 * B * (2 * H1 + H1 * H2 + H2 * F),
        transcendentals=2 * B,
        bytes_accessed=4 * (b_pad * (1 + F) + 2 * H1 + H1 * H2 + H2 * F + F),
    )

    out_fm = pl.pallas_call(
        mlp_kernel,
        out_shape=jax.ShapeDtypeStruct((F, b_pad), jnp.float32),
        grid=grid,
        in_specs=[
            pl.BlockSpec((1, tb), lambda i: (0, i)),       # x: streams per tile
            pl.BlockSpec((H1, 2), lambda i: (0, 0)),       # weights: resident
            pl.BlockSpec((H2, H1), lambda i: (0, 0)),
            pl.BlockSpec((F, H2), lambda i: (0, 0)),
            pl.BlockSpec((F, 1), lambda i: (0, 0)),
        ],
        out_specs=pl.BlockSpec((F, tb), lambda i: (0, i)),
        compiler_params=pltpu.CompilerParams(
            dimension_semantics=("parallel",),
            vmem_limit_bytes=32 * 1024 * 1024,  # headroom on v5e's 16 MiB default
        ),
        cost_estimate=cost,
    )(x_t, w0, w1, w2, b2_col)

    # Drop padded garbage columns (padding propagates cos(0)=1 through the MLP).
    if b_pad != B:
        out_fm = out_fm[:, :B]
    if feature_major_output:
        return out_fm                      # (F, B), lane-dense, no extra HBM pass
    return out_fm.T                        # module-compatible (B, F)


def reference_forward(x, w0, w1, w2, b2):
    e = 2.0 * jnp.pi * x
    h = jnp.concatenate([jnp.sin(e), jnp.cos(e)], axis=-1)
    h = jnp.where(h > 0, h, NEG_SLOPE * h)
    h = h @ w0.T
    h = jnp.where(h > 0, h, NEG_SLOPE * h)
    # note: first leaky applied post-layer0 in the module; redo properly below
    return h  # unused; see reference_forward_full


def reference_forward_full(x, w0, w1, w2, b2):
    def lrelu(h):
        return jnp.where(h > 0, h, NEG_SLOPE * h)
    e = 2.0 * jnp.pi * x
    h = jnp.concatenate([jnp.sin(e), jnp.cos(e)], axis=-1)   # (B, 2)
    h = lrelu(h @ w0.T)                                      # (B, H1)
    h = lrelu(h @ w1.T)                                      # (B, H2)
    return h @ w2.T + b2                                     # (B, F)


def _init_linear(key, fan_in, fan_out, bias):
    # Deterministic init mimicking torch.nn.Linear default (uniform +-1/sqrt(fan_in)),
    # stored in torch layout (out, in).
    kw, kb = jax.random.split(key)
    bound = 1.0 / math.sqrt(fan_in)
    w = jax.random.uniform(kw, (fan_out, fan_in), jnp.float32, -bound, bound)
    b = (jax.random.uniform(kb, (fan_out,), jnp.float32, -bound, bound)
         if bias else None)
    return w, b


if __name__ == "__main__":
    # SimpleMLP(feature_dim=4, layer_dims=[32, 32]) -> lin_dims = [2, 32, 32, 4]
    feature_dim = 4
    layer_dims = [32, 32]

    key = jax.random.PRNGKey(0)
    kx, k0, k1, k2, kx2 = jax.random.split(key, 5)

    w0, _ = _init_linear(k0, 2, layer_dims[0], bias=False)               # (32, 2)
    w1, _ = _init_linear(k1, layer_dims[0], layer_dims[1], bias=False)   # (32, 32)
    w2, b2 = _init_linear(k2, layer_dims[1], feature_dim, bias=True)     # (4, 32), (4,)

    # --- Check 1: small batch, single grid step, module-compatible (B, F) output.
    batch = 8
    x = jax.random.uniform(kx, (batch, 1), jnp.float32)     # sinusoidal embedding -> dim 2
    out = simple_mlp_forward(x, w0, w1, w2, b2)
    out = jax.block_until_ready(out)
    ref = reference_forward_full(x, w0, w1, w2, b2)
    assert out.shape == (batch, feature_dim)
    assert jnp.allclose(out, ref, atol=5e-5, rtol=5e-5)

    # --- Check 2: multi-tile grid (>=2 steps) + batch padding + feature-major output.
    batch2 = 300
    x2 = jax.random.uniform(kx2, (batch2, 1), jnp.float32)
    out_fm = simple_mlp_forward(x2, w0, w1, w2, b2, feature_major_output=True)
    out_fm = jax.block_until_ready(out_fm)
    ref2 = reference_forward_full(x2, w0, w1, w2, b2)
    assert out_fm.shape == (feature_dim, batch2)
    assert jnp.allclose(out_fm.T, ref2, atol=5e-5, rtol=5e-5)

    print("KERNEL_OK")
</pallas_src>

<mosaic_0001>
module attributes {stable_mosaic.version = 11 : i64} {
  func.func @mlp_kernel(%arg0: i32, %arg1: memref<1x128xf32, #tpu.memory_space<vmem>>, %arg2: memref<32x2xf32, #tpu.memory_space<vmem>>, %arg3: memref<32x32xf32, #tpu.memory_space<vmem>>, %arg4: memref<4x32xf32, #tpu.memory_space<vmem>>, %arg5: memref<4x1xf32, #tpu.memory_space<vmem>>, %arg6: memref<4x128xf32, #tpu.memory_space<vmem>>) attributes {dimension_semantics = [#tpu.dimension_semantics<parallel>], iteration_bounds = array<i64: 1>, scalar_prefetch = 0 : i64, scratch_operands = 0 : i64, tpu.core_type = #tpu.core_type<tc>, window_params = [{transform_indices = @transform_0, window_bounds = array<i64: 1, 128>}, {pipeline_mode = #tpu.pipeline_mode<synchronous>, transform_indices = @transform_1, window_bounds = array<i64: 32, 2>}, {pipeline_mode = #tpu.pipeline_mode<synchronous>, transform_indices = @transform_2, window_bounds = array<i64: 32, 32>}, {pipeline_mode = #tpu.pipeline_mode<synchronous>, transform_indices = @transform_3, window_bounds = array<i64: 4, 32>}, {pipeline_mode = #tpu.pipeline_mode<synchronous>, transform_indices = @transform_4, window_bounds = array<i64: 4, 1>}, {transform_indices = @transform_5, window_bounds = array<i64: 4, 128>}]} {
    %c0 = arith.constant 0 : index
    %c0_0 = arith.constant 0 : index
    %0 = vector.load %arg1[%c0, %c0_0] : memref<1x128xf32, #tpu.memory_space<vmem>>, vector<1x128xf32>
    %cst = arith.constant 6.28318548 : f32
    %1 = vector.broadcast %cst : f32 to vector<1x128xf32>
    %2 = arith.mulf %1, %0 : vector<1x128xf32>
    %cst_1 = arith.constant 1.57079637 : f32
    %3 = vector.broadcast %cst_1 : f32 to vector<1x128xf32>
    %4 = arith.addf %2, %3 : vector<1x128xf32>
    %5 = tpu.concatenate %2, %4 in 0 : vector<1x128xf32>, vector<1x128xf32> -> vector<2x128xf32>
    %6 = math.sin %5 : vector<2x128xf32>
    %7 = vector.extract_strided_slice %6 {offsets = [0, 0], sizes = [1, 128], strides = [1, 1]} : vector<2x128xf32> to vector<1x128xf32>
    %8 = vector.extract_strided_slice %6 {offsets = [1, 0], sizes = [1, 128], strides = [1, 1]} : vector<2x128xf32> to vector<1x128xf32>
    %c0_2 = arith.constant 0 : index
    %c0_3 = arith.constant 0 : index
    %9 = vector.load %arg2[%c0_2, %c0_3] : memref<32x2xf32, #tpu.memory_space<vmem>>, vector<32x2xf32>
    %10 = vector.extract_strided_slice %9 {offsets = [0, 0], sizes = [32, 1], strides = [1, 1]} : vector<32x2xf32> to vector<32x1xf32>
    %11 = vector.broadcast %10 : vector<32x1xf32> to vector<32x128xf32>
    %12 = vector.broadcast %7 : vector<1x128xf32> to vector<32x128xf32>
    %13 = arith.mulf %11, %12 : vector<32x128xf32>
    %14 = vector.extract_strided_slice %9 {offsets = [0, 1], sizes = [32, 1], strides = [1, 1]} : vector<32x2xf32> to vector<32x1xf32>
    %15 = vector.broadcast %14 : vector<32x1xf32> to vector<32x128xf32>
    %16 = vector.broadcast %8 : vector<1x128xf32> to vector<32x128xf32>
    %17 = arith.mulf %15, %16 : vector<32x128xf32>
    %18 = arith.addf %13, %17 : vector<32x128xf32>
    %cst_4 = arith.constant 0.00999999977 : f32
    %19 = vector.broadcast %cst_4 : f32 to vector<32x128xf32>
    %20 = arith.mulf %19, %18 : vector<32x128xf32>
    %21 = arith.maximumf %18, %20 : vector<32x128xf32>
    %c0_5 = arith.constant 0 : index
    %c0_6 = arith.constant 0 : index
    %22 = vector.load %arg3[%c0_5, %c0_6] : memref<32x32xf32, #tpu.memory_space<vmem>>, vector<32x32xf32>
    %cst_7 = arith.constant dense<0.000000e+00> : vector<32x128xf32>
    %23 = tpu.matmul %22, %21, %cst_7 {dimension_numbers = #tpu.dot_dimension_numbers<[1], [0], [0], [1], [0, 0, 1, 1], [], []>} : vector<32x32xf32>, vector<32x128xf32>, vector<32x128xf32> -> vector<32x128xf32>
    %cst_8 = arith.constant 0.00999999977 : f32
    %24 = vector.broadcast %cst_8 : f32 to vector<32x128xf32>
    %25 = arith.mulf %24, %23 : vector<32x128xf32>
    %26 = arith.maximumf %23, %25 : vector<32x128xf32>
    %c0_9 = arith.constant 0 : index
    %c0_10 = arith.constant 0 : index
    %27 = vector.load %arg4[%c0_9, %c0_10] : memref<4x32xf32, #tpu.memory_space<vmem>>, vector<4x32xf32>
    %cst_11 = arith.constant dense<0.000000e+00> : vector<4x128xf32>
    %28 = tpu.matmul %27, %26, %cst_11 {dimension_numbers = #tpu.dot_dimension_numbers<[1], [0], [0], [1], [0, 0, 1, 1], [], []>} : vector<4x32xf32>, vector<32x128xf32>, vector<4x128xf32> -> vector<4x128xf32>
    %c0_12 = arith.constant 0 : index
    %c0_13 = arith.constant 0 : index
    %29 = vector.load %arg5[%c0_12, %c0_13] : memref<4x1xf32, #tpu.memory_space<vmem>>, vector<4x1xf32>
    %30 = vector.broadcast %29 : vector<4x1xf32> to vector<4x128xf32>
    %31 = arith.addf %28, %30 : vector<4x128xf32>
    %c0_14 = arith.constant 0 : index
    %c0_15 = arith.constant 0 : index
    %32 = vector.load %arg6[%c0_14, %c0_15] : memref<4x128xf32, #tpu.memory_space<vmem>>, vector<4x128xf32>
    tpu.vector_store %arg6[%c0_14, %c0_15], %31 {strides = array<i32>} : memref<4x128xf32, #tpu.memory_space<vmem>>, vector<4x128xf32>,
    return
  }
  func.func @transform_0(%arg0: i32) -> (i32, i32) {
    %c0_i32 = arith.constant 0 : i32
    %c0_i32_0 = arith.constant 0 : i32
    return %c0_i32, %arg0 : i32, i32
  }
  func.func @transform_1(%arg0: i32) -> (i32, i32) {
    %c0_i32 = arith.constant 0 : i32
    %c0_i32_0 = arith.constant 0 : i32
    %c0_i32_1 = arith.constant 0 : i32
    return %c0_i32, %c0_i32_0 : i32, i32
  }
  func.func @transform_2(%arg0: i32) -> (i32, i32) {
    %c0_i32 = arith.constant 0 : i32
    %c0_i32_0 = arith.constant 0 : i32
    %c0_i32_1 = arith.constant 0 : i32
    return %c0_i32, %c0_i32_0 : i32, i32
  }
  func.func @transform_3(%arg0: i32) -> (i32, i32) {
    %c0_i32 = arith.constant 0 : i32
    %c0_i32_0 = arith.constant 0 : i32
    %c0_i32_1 = arith.constant 0 : i32
    return %c0_i32, %c0_i32_0 : i32, i32
  }
  func.func @transform_4(%arg0: i32) -> (i32, i32) {
    %c0_i32 = arith.constant 0 : i32
    %c0_i32_0 = arith.constant 0 : i32
    %c0_i32_1 = arith.constant 0 : i32
    return %c0_i32, %c0_i32_0 : i32, i32
  }
  func.func @transform_5(%arg0: i32) -> (i32, i32) {
    %c0_i32 = arith.constant 0 : i32
    %c0_i32_0 = arith.constant 0 : i32
    return %c0_i32, %arg0 : i32, i32
  }
}

</mosaic_0001>

<bundles_post_ra>
// kernel: tpu_custom_call.1
= control target key start
LH: loop header
LB: loop body
LE: loop exit
PB: predicated region body
PF: predicated region fallthrough
CT: control target
= control target key end

     0   :  { %v25_v1 = vlaneseq  ;;  %v521_v2 = vmov 1   ;;  %v522_v3 = vmov 0   ;;  %vm30_vm0 = vcmask 1040384   ;;  %s645_s0 = inlined_call_operand.vmem [shape: f32[1,128], index: 0, kind: input, shape index: {}]   ;;  %s646_s1 = inlined_call_operand.vmem [shape: f32[32,2], index: 1, kind: input, shape index: {}]   ;;  %s647_s2 = inlined_call_operand.vmem [shape: f32[32,32], index: 2, kind: input, shape index: {}]   ;;  %s648_s3 = inlined_call_operand.vmem [shape: f32[4,32], index: 3, kind: input, shape index: {}]   ;;  %s649_s4 = inlined_call_operand.vmem [shape: f32[4,1], index: 4, kind: input, shape index: {}]   ;;  %s650_s5 = inlined_call_operand.hbm [shape: f32[4,128], index: 5, kind: output, shape index: {}]  }
   0x1   :  { %v136_v0 = vld [vmem:[%s646_s1] sm:$0xff]  ;;  %487 = vset.pattern.permute.xlu1 %v521_v2  ;;  %486 = vset.pattern.permute.xlu0 %v522_v3  ;;  %v137_v7 = vld [vmem:[%s646_s1 + $0x8] sm:$0xff] }
   0x2   :  { %v21_v4 = vld [vmem:[%s645_s0] sm:$0x1]  ;;  %169 = vperm.xlu1 %487, %v136_v0   ;;  %142 = vperm.xlu0 %486, %v136_v0   ;;  %v569_v6 = vshrl.u32 %v25_v1, 7 }
   0x3   :  { %v22_v5 = vmul.f32 6.2831855, %v21_v4 }
   0x4   :  { %v27_v9 = vsub.s32 0, %v569_v6 }
   0x5   :  { %v23_v8 = vadd.f32 1.5707964, %v22_v5 }
   0x6   :  { %10 = vsyncpa [#allocation3], 0  ;;  %173 = vperm.xlu1 %487, %v137_v7   ;;  %147 = vperm.xlu0 %486, %v137_v7   ;;  %v138_v11 = vld [vmem:[%s646_s1 + $0x10] sm:$0xff]  ;;  %v139_v12 = vld [vmem:[%s646_s1 + $0x18] sm:$0xff]  ;;  %v523_v25 = vmov 683565275  }
   0x7   :  { %v28_v10 = vrot.slane %v23_v8, %v27_v9  ;;  %v524_v27 = vmov 2475754826   ;;  %v525_v29 = vmov 2131351028   ;;  %v526_v31 = vmov 2102212464  }
   0x8   :  { %v527_v33 = vmov 920167782   ;;  %v528_v40 = vmov 1326507024   ;;  %v204_v52 = vld [vmem:[%s647_s2] sm:$0xff]  ;;  %vm208_vm6 = vcmask 261120  }
   0x9   :  { %v583_v13 = vsel %vm30_vm0, %v22_v5, %v28_v10  ;;  %439 = vmatprep.mubr.msk.f32.mxu0 %vm208_vm6, %v204_v52  ;;  %vm530_vm15 = vmmov 0   ;;  %s532_s11 = smov [#allocation2]  }
   0xa   :  { %v35_v14 = vand.u32 2139095040, %v583_v13  ;;  %488 = vset.pattern.permute.xlu1 %v522_v3  ;;  %152 = vperm.xlu0 %486, %v138_v11   ;;  %v32_v16 = vand.u32 2147483647, %v583_v13  ;;  %vm34_vm9 = vcmp.lt.s32.totalorder %v583_v13, 0  ;;  %vm124_vm14 = vweird.f32 %v583_v13  ;;  %s401_s12 = sshll.u32 %s532_s11, 4  ;;  %s402_s12 = int_to_ptr.vmem [resolvable:$true] %s401_s12 }
   0xb   :  { %157 = vperm.xlu1 %488, %v139_v12   ;;  %s497_s13 = scalar_lea.vmem %s402_s12, 64  ;;  %p502_p1 = scmp.lt.s32.totalorder %s402_s12, %s402_s12 }
   0xc   :  { %v36_v15 = vshrl.u32 %v35_v14, 23  ;;  %v39_v19 = vand.u32 8388607, %v32_v16  ;;  %vm33_vm10 = vcmp.le.f32.partialorder %v32_v16, 0.7853982  ;;  %p498_p0 = scmp.ne.s32.totalorder %s402_s12, %s497_s13  ;;  %p503_p2 = scmp.lt.s32.totalorder %s497_s13, %s497_s13 }
   0xe   :  { %v409_v17 = vadd.s32 4294967169, %v36_v15  ;;  %489 = vset.pattern.permute.xlu0 %v521_v2  ;;  %v40_v22 = vor.u32 8388608, %v39_v19  ;;  %p504_p3 = por %p503_p2, %p502_p1 }
   0xf   :  { %490 = vset.pattern.permute.xlu1 %v521_v2  ;;  %177 = vperm.xlu0 %489, %v138_v11  }
  0x10   :  { %v42_v18 = vadd.s32 1, %v409_v17  ;;  %181 = vperm.xlu1 %490, %v139_v12   ;;  %v80_v42 = vshll.u32 %v40_v22, 8  ;;  %p505_p4 = pnand %p504_p3, %p498_p0 }
  0x12   :  { %vm43_vm1 = vcmp.gt.s32.totalorder %v42_v18, 0 }
  0x13   :  { %v44_v20 = vsel %vm43_vm1, %v42_v18, 0  ;;  %492 = vset.pattern.permute.xlu0 %v522_v3 }
  0x14   :  { %v46_v21 = vand.u32 31, %v44_v20  ;;  %v45_v23 = vshrl.u32 %v44_v20, 5  ;;  %491 = vset.pattern.permute.xlu1 %v522_v3 }
  0x16   :  { %v47_v24 = vsub.s32 32, %v46_v21  ;;  %v49_v26 = vshll.u32 %v523_v25, %v46_v21  ;;  %v52_v28 = vshll.u32 %v524_v27, %v46_v21  ;;  %v55_v30 = vshll.u32 %v525_v29, %v46_v21 }
  0x17   :  { %v58_v32 = vshll.u32 %v526_v31, %v46_v21  ;;  %v61_v34 = vshll.u32 %v527_v33, %v46_v21  ;;  %vm64_vm2 = vcmp.lt.s32.totalorder %v45_v23, 1  ;;  %vm67_vm3 = vcmp.lt.s32.totalorder %v45_v23, 4 }
  0x18   :  { %v48_v35 = vshrl.u32 %v523_v25, %v47_v24  ;;  %v50_v36 = vshrl.u32 %v524_v27, %v47_v24  ;;  %v53_v37 = vshrl.u32 %v525_v29, %v47_v24  ;;  %v56_v38 = vshrl.u32 %v526_v31, %v47_v24 }
  0x19   :  { %v59_v39 = vshrl.u32 %v527_v33, %v47_v24  ;;  %v62_v41 = vshrl.u32 %v528_v40, %v47_v24  ;;  %vm65_vm4 = vcmp.lt.s32.totalorder %v45_v23, 2  ;;  %vm66_vm5 = vcmp.lt.s32.totalorder %v45_v23, 3 }
  0x1a   :  { %v51_v43 = vor.u32 %v50_v36, %v49_v26  ;;  %v54_v44 = vor.u32 %v53_v37, %v52_v28  ;;  %v57_v45 = vor.u32 %v56_v38, %v55_v30 }
  0x1b   :  { %v60_v46 = vor.u32 %v59_v39, %v58_v32  ;;  %v63_v47 = vor.u32 %v62_v41, %v61_v34 }
  0x1c   :  { %v68_v48 = vsel %vm64_vm2, %v48_v35, %v51_v43  ;;  %v69_v49 = vsel %vm67_vm3, %v57_v45, 2102212464  ;;  %v72_v50 = vsel %vm64_vm2, %v51_v43, %v54_v44  ;;  %v76_v51 = vsel %vm64_vm2, %v54_v44, %v57_v45 }
  0x1d   :  { %v70_v53 = vsel %vm66_vm5, %v54_v44, %v69_v49  ;;  %v73_v54 = vsel %vm67_vm3, %v60_v46, 920167782  ;;  %v77_v55 = vsel %vm67_vm3, %v63_v47, 1326507024 }
  0x1e   :  { %v74_v56 = vsel %vm66_vm5, %v57_v45, %v73_v54  ;;  %v78_v57 = vsel %vm66_vm5, %v60_v46, %v77_v55  ;;  %v71_v58 = vsel %vm65_vm4, %v68_v48, %v70_v53 }
  0x1f   :  { %v75_v59 = vsel %vm65_vm4, %v72_v50, %v74_v56  ;;  %v79_v60 = vsel %vm65_vm4, %v76_v51, %v78_v57  ;;  %v87_v1 = vmul.u32 %v80_v42, %v71_v58 }
  0x20   :  { %v596_v61 = vmul.u32.u64.low %v80_v42, %v79_v60  ;;  %v597_v62 = vmul.u32.u64.high %v80_v42, %v79_v60, %v596_v61  ;;  %v599_v63 = vmul.u32.u64.low %v80_v42, %v75_v59  ;;  %v600_v0 = vmul.u32.u64.high %v80_v42, %v75_v59, %v599_v63 }
  0x21   :  { %v186_v42 = vsub.s32 1, %v569_v6 }
  0x22   :  { %vm89_vm7 = vc.u32 %v597_v62, %v599_v63  ;;  %v90_v2 = vadd.s32 1, %v600_v0  ;;  %v88_v17 = vadd.s32 %v599_v63, %v597_v62 }
  0x24   :  { %v91_v3 = vsel %vm89_vm7, %v90_v2, %v600_v0 }
  0x25   :  { %v92_v4 = vadd.s32 %v91_v3, %v87_v1 }
  0x27   :  { %v93_v5 = vadd.s32 536870912, %v92_v4 }
  0x29   :  { %v94_v7 = vshrl.u32 %v93_v5, 30 }
  0x2b   :  { %v95_v8 = vshll.u32 %v94_v7, 30  ;;  %v118_v29 = vsub.s32 4, %v94_v7 }
  0x2d   :  { %v96_v10 = vsub.s32 %v92_v4, %v95_v8  ;;  %v119_v32 = vsel %vm34_vm9, %v118_v29, %v94_v7 }
  0x2e   :  { %v121_v35 = vsel %vm33_vm10, 0, %v119_v32 }
  0x2f   :  { %v98_v11 = vsub.s32 0, %v96_v10  ;;  %v125_v36 = vadd.s32 3, %v121_v35  ;;  %v314_v35 = vld [vmem:[%s648_s3] sm:$0xf] }
  0x31   :  { %v410_v12 = vmin.u32 %v98_v11, %v96_v10  ;;  %v126_v37 = vand.u32 3, %v125_v36 }
  0x33   :  { %v100_v14 = vclz %v410_v12  ;;  %vm131_vm11 = vcmp.eq.s32.totalorder %v126_v37, 2  ;;  %vm128_vm12 = vcmp.eq.s32.totalorder %v126_v37, 0  ;;  %vm127_vm13 = vcmp.lt.s32.totalorder %v126_v37, 2 }
  0x35   :  { %v411_v15 = vadd.s32 4294967294, %v100_v14  ;;  %v205_v14 = vld [vmem:[%s647_s2 + $0x8] sm:$0xff] }
  0x37   :  { %vm412_vm8 = vcmp.lt.s32.totalorder %v411_v15, 0 }
  0x38   :  { %v103_v18 = vsel %vm412_vm8, 0, %v411_v15  ;;  %v206_v15 = vld [vmem:[%s647_s2 + $0x10] sm:$0xff] }
  0x39   :  { %v104_v19 = vsub.s32 32, %v103_v18  ;;  %v105_v20 = vshll.u32 %v96_v10, %v103_v18  ;;  %v108_v21 = vsub.s32 4294967266, %v103_v18  ;;  %v529_v18 = vmov 0.0|0.0  }
  0x3a   :  { %464 = vmatprep.subr.bf16.mxu1 %v529_v18 }
  0x3b   :  { %v106_v22 = vshrl.u32 %v88_v17, %v104_v19  ;;  %v109_v23 = vadd.s32 127, %v108_v21  ;;  %v207_v17 = vld [vmem:[%s647_s2 + $0x18] sm:$0xff]  ;;  %v531_v19 = vmov 0.0  }
  0x3c   :  { %453 = vmatprep.mubr.msk.f32.mxu1 %vm530_vm15, %v531_v19 }
  0x3d   :  { %v107_v24 = vor.u32 %v106_v22, %v105_v20  ;;  %v110_v25 = vshll.u32 %v109_v23, 23  ;;  %v315_v20 = vld [vmem:[%s649_s4] sm:$0xf] }
  0x3e   :  { %318 = vperm.xlu1 %491, %v315_v20  }
  0x3f   :  { %v111_v26 = vor.u32 4788187, %v110_v25  ;;  %v114_v27 = vcvt.s32.f32 %v107_v24 }
  0x41   :  { %v112_v28 = vand.u32 2147483647, %v111_v26 }
  0x43   :  { %v115_v30 = vmul.f32 %v114_v27, %v112_v28 }
  0x45   :  { %v116_v31 = vxor.u32 2147483648, %v115_v30 }
  0x47   :  { %v117_v33 = vsel %vm34_vm9, %v116_v31, %v115_v30 }
  0x48   :  { %v120_v34 = vsel %vm33_vm10, %v583_v13, %v117_v33 }
  0x49   :  { %493 = vcosq.f32 %v120_v34 }
  0x4a   :  { %495 = vsinq.f32 %v120_v34 }
  0x53   :  { %v494_v38 = vpop.eup %493 }
  0x54   :  { %v496_v39 = vpop.eup %495  ;;  %v132_v40 = vxor.u32 2147483648, %v494_v38 }
  0x55   :  { %v129_v41 = vxor.u32 2147483648, %v496_v39 }
  0x56   :  { %v133_v16 = vsel %vm131_vm11, %v132_v40, %v496_v39 }
  0x57   :  { %v130_v43 = vsel %vm128_vm12, %v494_v38, %v129_v41 }
  0x58   :  { %v134_v44 = vsel %vm127_vm13, %v130_v43, %v133_v16 }
  0x59   :  { %v135_v45 = vsel %vm124_vm14, nan, %v134_v44 }
  0x5a   :  { %v187_v46 = vrot.slane %v135_v45, %v186_v42  ;;  %v163_v47 = vrot.slane %v135_v45, %v27_v9 }
  0x81   :  { %v170_v48 = vpop.permute.xlu1 %169  ;;  %v143_v49 = vpop.permute.xlu0 %142 }
  0x82   :  { %v188_v50 = vmul.f32 %v187_v46, %v170_v48  ;;  %v164_v51 = vmul.f32 %v163_v47, %v143_v49 }
  0x84   :  { %v192_v52 = vadd.f32 %v188_v50, %v164_v51 }
  0x85   :  { %v174_v53 = vpop.permute.xlu1 %173  ;;  %v148_v54 = vpop.permute.xlu0 %147 }
  0x86   :  { %v189_v55 = vmul.f32 %v187_v46, %v174_v53  ;;  %v165_v56 = vmul.f32 %v163_v47, %v148_v54  ;;  %v196_v13 = vmul.f32 0.01, %v192_v52 }
  0x88   :  { %v193_v57 = vadd.f32 %v189_v55, %v165_v56  ;;  %v200_v61 = vmax.f32 %v192_v52, %v196_v13 }
  0x89   :  { %v153_v58 = vpop.permute.xlu0 %152 }
  0x8a   :  { %v197_v59 = vmul.f32 0.01, %v193_v57  ;;  %v158_v60 = vpop.permute.xlu1 %157  ;;  %v166_v6 = vmul.f32 %v163_v47, %v153_v58 }
  0x8b   :  { %v167_v2 = vmul.f32 %v163_v47, %v158_v60 }
  0x8c   :  { %v201_v62 = vmax.f32 %v193_v57, %v197_v59 }
  0x8e   :  { %v178_v63 = vpop.permute.xlu0 %177  ;;  %v456_v0 = vpack.c.bf16 %v201_v62, %v200_v61 }
  0x8f   :  { %v190_v9 = vmul.f32 %v187_v46, %v178_v63  ;;  %v182_v1 = vpop.permute.xlu1 %181 }
  0x90   :  { %v191_v3 = vmul.f32 %v187_v46, %v182_v1  ;;  %457 = vmatprep.subr.bf16.mxu0 %v456_v0 }
  0x91   :  { %v194_v4 = vadd.f32 %v190_v9, %v166_v6  ;;  %459 = vmatpush3.bf16.msra.mxu0 %v456_v0 }
  0x92   :  { %v195_v5 = vadd.f32 %v191_v3, %v167_v2 }
  0x93   :  { %v198_v7 = vmul.f32 0.01, %v194_v4 }
  0x94   :  { %v199_v8 = vmul.f32 0.01, %v195_v5 }
  0x95   :  { %v202_v10 = vmax.f32 %v194_v4, %v198_v7 }
  0x96   :  { %v203_v11 = vmax.f32 %v195_v5, %v199_v8 }
  0x98   :  { %v460_v12 = vpack.c.bf16 %v203_v11, %v202_v10 }
  0x9a   :  { %461 = vmatprep.subr.bf16.mxu0 %v460_v12 }
  0x9b   :  { %463 = vmatpush3.bf16.msra.mxu0 %v460_v12 }
  0x9e   :  { %440 = vmatmul.mubr.msk.f32.vlgmr.msra.gmra.mrb[0].mxu0 %vm208_vm6, %v205_v14 }
  0x9f   :  { %442 = vmatprep.mubr.msk.f32.mxu0 %vm208_vm6, %v206_v15 }
  0xa2   :  { %443 = vmatmul.mubr.msk.f32.gmra.mrb[2].mxu0 %vm208_vm6, %v207_v17 }
  0xbd   :  { %v319_v36 = vpop.permute.xlu1 %318 }
 0x171   :  { %v441_v21 = vpop.f32.mrb[0].mxu0 }
 0x172   :  { %v307_v22 = vmul.f32 0.01, %v441_v21  ;;  %v287_v23 = vpop.f32.mrb[1].mxu0 }
 0x173   :  { %v306_v24 = vmul.f32 0.01, %v287_v23 }
 0x174   :  { %v311_v25 = vmax.f32 %v441_v21, %v307_v22 }
 0x175   :  { %v310_v26 = vmax.f32 %v287_v23, %v306_v24  ;;  %v444_v27 = vpop.f32.mrb[2].mxu0 }
 0x176   :  { %v309_v28 = vmul.f32 0.01, %v444_v27  ;;  %v297_v29 = vpop.f32.mrb[3].mxu0 }
 0x177   :  { %v308_v30 = vmul.f32 0.01, %v297_v29  ;;  %v465_v31 = vpack.c.bf16 %v311_v25, %v310_v26 }
 0x178   :  { %v313_v32 = vmax.f32 %v444_v27, %v309_v28 }
 0x179   :  { %v312_v33 = vmax.f32 %v297_v29, %v308_v30  ;;  %466 = vmatpush3.bf16.msra.mxu1 %v465_v31 }
 0x17a   :  { %467 = vmatprep.subr.bf16.mxu1 %v529_v18 }
 0x17b   :  { %v468_v34 = vpack.c.bf16 %v313_v32, %v312_v33 }
 0x17d   :  { %469 = vmatpush3.bf16.msra.mxu1 %v468_v34 }
 0x180   :  { %454 = vmatmul.mubr.msk.f32.vlgmr.msra.gmra.mrb[0].mxu1 %vm208_vm6, %v314_v35 }
 0x253   :  { %v390_v37 = vpop.f32.mrb[0].mxu1 }
 0x254   :  { %v391_v38 = vadd.f32 %v390_v37, %v319_v36  ;;  %v455_v39 = vpop.f32.mrb[1].mxu1 }
 0x256   :  { %394 = vst [vmem:[#allocation2] sm:$0xf] %v391_v38 }
 0x257   :  { %508 = shalt.err (!%p505_p4)
}
 0x258   :  { %s509_s3 = scalar_lea.hbm %s650_s5, 64 }
 0x259   :  { %p510_p5 = scmp.ne.s32.totalorder %s650_s5, %s509_s3  ;;  %p513_p6 = scmp.lt.u32.totalorder %s509_s3, %s650_s5 }
 0x25b   :  { %p515_p7 = pnand %p513_p6, %p510_p5 }
 0x25d   :  { %518 = shalt.err (!%p515_p7)
}
 0x25e   :  { %404 = dma.vmem_to_hbm [thread:$0]  %s402_s12, 64, %s650_s5, [#allocation3]  }
 0x25f   :  { %519 = dma.done.wait [#allocation3], 64  }
 0x260   :  { %520 = vsyncadd [#allocation3], 4294967232 }
 0x261   :  { %408 = vsyncpa [#allocation3], 1 }

</bundles_post_ra>
